<compile_context>
chip_gen: v5e
topology: v5e:2x2
jax: 0.10.0
libtpu: 0.0.40
codegen_flags: <defaults>
</compile_context>

<pallas_src>
import functools
import math

import jax
import jax.numpy as jnp
from jax.experimental import pallas as pl
from jax.experimental.pallas import tpu as pltpu

_MAX_TILE_N = 512  # lane-dense tile (multiple of 128); good on v5e/v6e/v7x


def _linear_kernel(l_ref, x_ref, o_ref):
    # One lane tile of Y = L @ X, accumulated in f32 on the MXU.
    o_ref[...] = jnp.dot(
        l_ref[...], x_ref[...], preferred_element_type=jnp.float32
    ).astype(o_ref.dtype)


def _pallas_matmul(L, X):
    """L: (M, A), X: (A, N), real dtypes -> (M, N) in X.dtype."""
    M, A = L.shape
    A2, N = X.shape
    assert A == A2

    n128 = ((N + 127) // 128) * 128          # round N up to lane width
    tile_n = min(_MAX_TILE_N, n128)          # big lane tile, capped for tiny N
    grid_n = pl.cdiv(N, tile_n)              # boundary block is masked by Pallas

    # VMEM budget: L (double-buffered) + double-buffered X / Y lane tiles.
    need = 2 * (M * A * L.dtype.itemsize
                + A * tile_n * X.dtype.itemsize
                + M * tile_n * X.dtype.itemsize)
    vmem_limit = int(max(32 * 1024 * 1024, min(2 * need, 64 * 1024 * 1024)))

    return pl.pallas_call(
        _linear_kernel,
        out_shape=jax.ShapeDtypeStruct((M, N), X.dtype),
        grid_spec=pltpu.PrefetchScalarGridSpec(
            num_scalar_prefetch=0,
            grid=(grid_n,),
            in_specs=[
                # L: full matrix, resident across the whole grid (M, A tiny).
                pl.BlockSpec((M, A), lambda j: (0, 0)),
                # X: lane-dense tile along N.
                pl.BlockSpec((A, tile_n), lambda j: (0, j)),
            ],
            out_specs=pl.BlockSpec((M, tile_n), lambda j: (0, j)),
        ),
        compiler_params=pltpu.CompilerParams(
            dimension_semantics=("parallel",),   # shards N tiles across TCs (v7x)
            vmem_limit_bytes=vmem_limit,
        ),
    )(L, X)


@functools.partial(jax.jit, static_argnames=("c1", "c2"))
def linear_layer_forward(L, x, c1=-4, c2=-1):
    """JAX/Pallas equivalent of LinearLayer.forward."""
    ndim = x.ndim
    # Mirror the torch check verbatim (it can never trigger: `a % positive`
    # is never -1 in Python), so c1p == c1 in practice.
    c1p = c2 if (c1 % x.shape[0]) == -1 else c1
    k1 = c1p % ndim
    k2 = c2 % ndim

    # Which original axis of x ends up at x_temp's -2 position (the axis the
    # matmul contracts).  The output keeps every other axis in place and puts
    # the M-sized axis back at that same position.
    axes = list(range(ndim))
    axes[k2], axes[ndim - 1] = axes[ndim - 1], axes[k2]
    axes[k1], axes[ndim - 2] = axes[ndim - 2], axes[k1]
    k = axes[ndim - 2]

    A = x.shape[k]
    M = L.shape[0]
    rest_shape = x.shape[:k] + x.shape[k + 1:]
    N = math.prod(rest_shape) if rest_shape else 1

    # Bring the contracted axis to the front (no-op for the default c1=-4 on
    # 4-D inputs) and take a free 2-D view; no B<->C transpose is materialized.
    x2 = jnp.moveaxis(x, k, 0).reshape(A, N)

    if jnp.iscomplexobj(x):
        # torch promotes L to complex(L, 0); applying the real L to the real
        # and imaginary parts is identical.  Single matmul on a real (A, 2N)
        # view with re/im concatenated along the non-contracted axis.
        xr = jnp.concatenate([jnp.real(x2), jnp.imag(x2)], axis=-1)
        y2 = _pallas_matmul(L.astype(xr.dtype), xr)              # (M, 2N)
        y2 = jax.lax.complex(y2[:, :N], y2[:, N:]).astype(x.dtype)
    else:
        y2 = _pallas_matmul(L.astype(x.dtype), x2)               # (M, N)

    return jnp.moveaxis(y2.reshape((M,) + rest_shape), 0, k)


if __name__ == "__main__":
    key = jax.random.PRNGKey(0)
    k_l, k_x, k_xi, k_x3 = jax.random.split(key, 4)
    HI = jax.lax.Precision.HIGHEST

    # x: (A, B, C, D) with the transformed axis A at position -4 (default c1).
    A, B, C, D = 4, 2, 8, 16
    M = 6
    L = jax.random.normal(k_l, (M, A), dtype=jnp.float32)         # buffer L
    x = jax.random.normal(k_x, (A, B, C, D), dtype=jnp.float32)

    # 1) real input, default c1/c2
    y = jax.block_until_ready(linear_layer_forward(L, x, c1=-4, c2=-1))
    y_ref = jnp.einsum("ma,abcd->mbcd", L, x, precision=HI)
    assert y.shape == (M, B, C, D)
    assert jnp.allclose(y, y_ref, atol=1e-5, rtol=1e-5)

    # 2) complex input, default c1/c2 (single-matmul complex path)
    xc = (x + 1j * jax.random.normal(k_xi, (A, B, C, D), dtype=jnp.float32)
          ).astype(jnp.complex64)
    yc = jax.block_until_ready(linear_layer_forward(L, xc, c1=-4, c2=-1))
    yc_ref = jnp.einsum("ma,abcd->mbcd", L.astype(jnp.complex64), xc,
                        precision=HI)
    assert yc.shape == (M, B, C, D)
    assert jnp.allclose(yc, yc_ref, atol=1e-5, rtol=1e-5)

    # 3) non-default c1 and an N that is not a multiple of 128
    #    (exercises the masked boundary block: no pad / slice copies).
    x3 = jax.random.normal(k_x3, (3, 5, A, 20), dtype=jnp.float32)
    y3 = jax.block_until_ready(linear_layer_forward(L, x3, c1=-2, c2=-1))
    y3_ref = jnp.einsum("ma,bcad->bcmd", L, x3, precision=HI)
    assert y3.shape == (3, 5, M, 20)
    assert jnp.allclose(y3, y3_ref, atol=1e-5, rtol=1e-5)

    print("KERNEL_OK")
</pallas_src>

<mosaic_0001>
module attributes {stable_mosaic.version = 11 : i64} {
  func.func @_linear_kernel(%arg0: i32, %arg1: memref<6x4xf32, #tpu.memory_space<vmem>>, %arg2: memref<4x256xf32, #tpu.memory_space<vmem>>, %arg3: memref<6x256xf32, #tpu.memory_space<vmem>>) attributes {dimension_semantics = [#tpu.dimension_semantics<parallel>], iteration_bounds = array<i64: 1>, scalar_prefetch = 0 : i64, scratch_operands = 0 : i64, tpu.core_type = #tpu.core_type<tc>, window_params = [{pipeline_mode = #tpu.pipeline_mode<synchronous>, transform_indices = @transform_0, window_bounds = array<i64: 6, 4>}, {transform_indices = @transform_1, window_bounds = array<i64: 4, 256>}, {transform_indices = @transform_2, window_bounds = array<i64: 6, 256>}]} {
    %c0 = arith.constant 0 : index
    %c0_0 = arith.constant 0 : index
    %0 = vector.load %arg1[%c0, %c0_0] : memref<6x4xf32, #tpu.memory_space<vmem>>, vector<6x4xf32>
    %c0_1 = arith.constant 0 : index
    %c0_2 = arith.constant 0 : index
    %1 = vector.load %arg2[%c0_1, %c0_2] : memref<4x256xf32, #tpu.memory_space<vmem>>, vector<4x256xf32>
    %cst = arith.constant dense<0.000000e+00> : vector<6x256xf32>
    %2 = tpu.matmul %0, %1, %cst {dimension_numbers = #tpu.dot_dimension_numbers<[1], [0], [0], [1], [0, 0, 1, 1], [], []>} : vector<6x4xf32>, vector<4x256xf32>, vector<6x256xf32> -> vector<6x256xf32>
    %c0_3 = arith.constant 0 : index
    %c0_4 = arith.constant 0 : index
    %3 = vector.load %arg3[%c0_3, %c0_4] : memref<6x256xf32, #tpu.memory_space<vmem>>, vector<6x256xf32>
    tpu.vector_store %arg3[%c0_3, %c0_4], %2 {strides = array<i32>} : memref<6x256xf32, #tpu.memory_space<vmem>>, vector<6x256xf32>,
    return
  }
  func.func @transform_0(%arg0: i32) -> (i32, i32) {
    %c0_i32 = arith.constant 0 : i32
    %c0_i32_0 = arith.constant 0 : i32
    %c0_i32_1 = arith.constant 0 : i32
    return %c0_i32, %c0_i32_0 : i32, i32
  }
  func.func @transform_1(%arg0: i32) -> (i32, i32) {
    %c0_i32 = arith.constant 0 : i32
    %c0_i32_0 = arith.constant 0 : i32
    return %c0_i32, %arg0 : i32, i32
  }
  func.func @transform_2(%arg0: i32) -> (i32, i32) {
    %c0_i32 = arith.constant 0 : i32
    %c0_i32_0 = arith.constant 0 : i32
    return %c0_i32, %arg0 : i32, i32
  }
}

</mosaic_0001>

<bundles_post_ra>
// kernel: linear_layer_forward.1
= control target key start
LH: loop header
LB: loop body
LE: loop exit
PB: predicated region body
PF: predicated region fallthrough
CT: control target
= control target key end

     0   :  { %vm21_vm0 = vcmask 1043456   ;;  %vm17_vm1 = vcmask 31744   ;;  %s103_s1 = inlined_call_operand.vmem [shape: f32[4,256], index: 1, kind: input, shape index: {}]   ;;  %s104_s0 = inlined_call_operand.vmem [shape: f32[6,4], index: 0, kind: input, shape index: {}]   ;;  %s105_s2 = inlined_call_operand.vmem [shape: f32[6,256], index: 2, kind: output, shape index: {}]  }
   0x1   :  { %v12_v0 = vld [vmem:[%s103_s1] sm:$0xff] }
   0x2   :  { %14 = vst [vmem:[#allocation1] ss:$2 sm:$0xff] %v12_v0  ;;  %v11_v1 = vld [vmem:[%s104_s0] sm:$0x3f] }
   0x9   :  { %v15_v2 = vld.sshfl [vmem:[#allocation1] sm:$0xff pattern:$0x75316420]  ;;  %v16_v3 = vld.sshfl [vmem:[#allocation1 + $0x8] sm:$0xff pattern:$0x75316420] }
   0xa   :  { %72 = vmatpush.msk.msra.mxu0 %vm21_vm0, %v15_v2  ;;  %74 = vmatpush.msk.msra.mxu1 %vm21_vm0, %v16_v3 }
   0xb   :  { %73 = vmatmul.msk.f32.vlgmr.msra.gmra.mxu0 %vm17_vm1, %v11_v1  ;;  %75 = vmatmul.msk.f32.vlgmr.msra.gmra.mxu1 %vm17_vm1, %v11_v1 }
  0x88   :  { %v43_v4 = vpop.f32.mrf.mxu0  ;;  %v63_v5 = vpop.f32.mrf.mxu1 }
  0x89   :  { %66 = vst [vmem:[%s105_s2] sm:$0x3f] %v43_v4 }
  0x8a   :  { %67 = vst [vmem:[%s105_s2 + $0x8] sm:$0x3f] %v63_v5 }

</bundles_post_ra>
